<compile_context>
chip_gen: v5e
topology: v5e:2x2
jax: 0.10.0
libtpu: 0.0.40
codegen_flags: <defaults>
</compile_context>

<pallas_src>
import functools

import jax
import jax.numpy as jnp
from jax.experimental import pallas as pl
from jax.experimental.pallas import tpu as pltpu


FEATURE_NUMBER = 7
J = 3
EPS = 1e-12          # torch.nn.functional.normalize default
TILE_B = 1024        # batch columns (lanes) per grid step


def _round_up(x, m):
    return ((x + m - 1) // m) * m


def _direction_kernel(ft_ref, w1_ref, b1_ref, w2_ref, b2_ref, w3_ref, b3_ref,
                      o_ref, *, j):
    """One batch tile, transposed layout: columns = batch (lane axis)."""
    ft = ft_ref[...]                                                   # (F, TB)

    h1 = jnp.tanh(
        jnp.dot(w1_ref[...], ft, preferred_element_type=jnp.float32)
        + b1_ref[...])                                                 # (2J, TB)
    h2 = jnp.tanh(
        jnp.dot(w2_ref[...], h1, preferred_element_type=jnp.float32)
        + b2_ref[...])                                                 # (2J, TB)
    l = (jnp.dot(w3_ref[...], h2, preferred_element_type=jnp.float32)
         + b3_ref[...])                                                # (3J, TB)

    # Fused group reduction: M = G @ G.T is the (3J, 3J) block-diagonal matrix
    # of 3x3 ones, so M @ (l*l) lands each triple's sum-of-squares on every
    # row of that triple in a single MXU op.  Built from iota comparisons so
    # it is a compile-time constant (no extra input / DMA / VMEM buffer).
    three_j = 3 * j
    r = jax.lax.broadcasted_iota(jnp.int32, (three_j, three_j), 0)
    c = jax.lax.broadcasted_iota(jnp.int32, (three_j, three_j), 1)
    rg = jnp.zeros_like(r)
    cg = jnp.zeros_like(c)
    for g in range(1, j):                      # group id without integer div
        rg = rg + (r >= 3 * g).astype(jnp.int32)
        cg = cg + (c >= 3 * g).astype(jnp.int32)
    m = (rg == cg).astype(jnp.float32)                                 # (3J, 3J)

    sqsum = jnp.dot(m, l * l, preferred_element_type=jnp.float32)      # (3J, TB)
    # 1/max(||x||, eps) == rsqrt(max(||x||^2, eps^2)); rsqrt -> EUP, mul -> VPU.
    inv = jax.lax.rsqrt(jnp.maximum(sqsum, EPS * EPS))
    o_ref[...] = (l * inv).astype(o_ref.dtype)


@functools.partial(jax.jit, static_argnames=("j",))
def direction_computer(f, w1, b1, w2, b2, w3, b3, j=J):
    """f: (B, feature_number) float32 -> (B, J, 3) float32.

    Parameters are stored nn.Linear-like as w: (fan_in, fan_out), b: (fan_out,)
    (i.e. x @ w + b); the wrapper transposes them into the (out, in) layout the
    transposed-compute kernel expects.
    """
    b, feat = f.shape
    two_j, three_j = 2 * j, 3 * j

    # Lane-dense transposed layout: batch on the 128-lane axis, zero-padded to
    # a whole number of tiles so every load/store is full-width and unmasked.
    tile_b = min(TILE_B, _round_up(b, 128))
    b_pad = _round_up(b, tile_b)
    ft = jnp.pad(f.astype(jnp.float32).T, ((0, 0), (0, b_pad - b)))    # (F, Bp)

    # x @ W + b  ==  W.T @ x.T + b[:, None]  in transposed layout.
    w1t = w1.T.astype(jnp.float32)                                     # (2J, F)
    w2t = w2.T.astype(jnp.float32)                                     # (2J, 2J)
    w3t = w3.T.astype(jnp.float32)                                     # (3J, 2J)
    b1c = b1.reshape(two_j, 1).astype(jnp.float32)
    b2c = b2.reshape(two_j, 1).astype(jnp.float32)
    b3c = b3.reshape(three_j, 1).astype(jnp.float32)

    n_tiles = b_pad // tile_b
    const = lambda i: (0, 0)        # weights/biases: resident, never re-fetched
    tiled = lambda i: (0, i)        # activations: walk the batch tiles

    flops = (2 * b_pad * (two_j * feat + two_j * two_j
                          + three_j * two_j + three_j * three_j)
             + 5 * b_pad * three_j)
    transcendentals = b_pad * (2 * two_j + three_j)    # two tanh layers + rsqrt
    bytes_accessed = 4 * (b_pad * (feat + three_j)
                          + two_j * feat + two_j * two_j + three_j * two_j
                          + 2 * two_j + three_j)

    out_t = pl.pallas_call(
        functools.partial(_direction_kernel, j=j),
        out_shape=jax.ShapeDtypeStruct((three_j, b_pad), jnp.float32),
        grid=(n_tiles,),
        in_specs=[
            pl.BlockSpec((feat, tile_b), tiled),       # f^T batch tile
            pl.BlockSpec((two_j, feat), const),        # W1 (out, in)
            pl.BlockSpec((two_j, 1), const),           # b1
            pl.BlockSpec((two_j, two_j), const),       # W2
            pl.BlockSpec((two_j, 1), const),           # b2
            pl.BlockSpec((three_j, two_j), const),     # W3
            pl.BlockSpec((three_j, 1), const),         # b3
        ],
        out_specs=pl.BlockSpec((three_j, tile_b), tiled),
        compiler_params=pltpu.CompilerParams(
            dimension_semantics=("parallel",)),        # v7x: shard across 2 TCs
        cost_estimate=pl.CostEstimate(
            flops=flops, transcendentals=transcendentals,
            bytes_accessed=bytes_accessed),
    )(ft, w1t, b1c, w2t, b2c, w3t, b3c)

    # (3J, Bp) -> (B, 3J) -> (B, J, 3): slice off padding + nn.Unflatten glue.
    return out_t[:, :b].T.reshape(b, j, 3)


def init_params(key, feature_number=FEATURE_NUMBER, j=J):
    """Deterministic synthetic parameters with nn.Linear-like uniform init."""
    def linear(k, fan_in, fan_out):
        kw, kb = jax.random.split(k)
        bound = 1.0 / jnp.sqrt(fan_in)
        w = jax.random.uniform(kw, (fan_in, fan_out), jnp.float32, -bound, bound)
        b = jax.random.uniform(kb, (fan_out,), jnp.float32, -bound, bound)
        return w, b

    k1, k2, k3 = jax.random.split(key, 3)
    w1, b1 = linear(k1, feature_number, 2 * j)
    w2, b2 = linear(k2, 2 * j, 2 * j)
    w3, b3 = linear(k3, 2 * j, 3 * j)
    return w1, b1, w2, b2, w3, b3


def _reference(f, w1, b1, w2, b2, w3, b3, j=J):
    h1 = jnp.tanh(f @ w1 + b1)
    h2 = jnp.tanh(h1 @ w2 + b2)
    l = (h2 @ w3 + b3).reshape(f.shape[0], j, 3)
    denom = jnp.maximum(jnp.linalg.norm(l, axis=2, keepdims=True), EPS)
    return l / denom


if __name__ == "__main__":
    key = jax.random.PRNGKey(0)
    kx, kp = jax.random.split(key)

    batch = 8
    f = jax.random.normal(kx, (batch, FEATURE_NUMBER), jnp.float32)
    params = init_params(kp)

    out = direction_computer(f, *params)
    out = jax.block_until_ready(out)

    ref = _reference(f, *params)
    assert out.shape == (batch, J, 3)
    assert jnp.allclose(out, ref, atol=1e-5, rtol=1e-5), "mismatch vs JAX reference"

    print("KERNEL_OK")
</pallas_src>

<mosaic_0001>
module attributes {stable_mosaic.version = 11 : i64} {
  func.func @_direction_kernel(%arg0: i32, %arg1: memref<7x128xf32, #tpu.memory_space<vmem>>, %arg2: memref<6x7xf32, #tpu.memory_space<vmem>>, %arg3: memref<6x1xf32, #tpu.memory_space<vmem>>, %arg4: memref<6x6xf32, #tpu.memory_space<vmem>>, %arg5: memref<6x1xf32, #tpu.memory_space<vmem>>, %arg6: memref<9x6xf32, #tpu.memory_space<vmem>>, %arg7: memref<9x1xf32, #tpu.memory_space<vmem>>, %arg8: memref<9x128xf32, #tpu.memory_space<vmem>>) attributes {dimension_semantics = [#tpu.dimension_semantics<parallel>], iteration_bounds = array<i64: 1>, scalar_prefetch = 0 : i64, scratch_operands = 0 : i64, tpu.core_type = #tpu.core_type<tc>, window_params = [{transform_indices = @transform_0, window_bounds = array<i64: 7, 128>}, {pipeline_mode = #tpu.pipeline_mode<synchronous>, transform_indices = @transform_1, window_bounds = array<i64: 6, 7>}, {pipeline_mode = #tpu.pipeline_mode<synchronous>, transform_indices = @transform_2, window_bounds = array<i64: 6, 1>}, {pipeline_mode = #tpu.pipeline_mode<synchronous>, transform_indices = @transform_3, window_bounds = array<i64: 6, 6>}, {pipeline_mode = #tpu.pipeline_mode<synchronous>, transform_indices = @transform_4, window_bounds = array<i64: 6, 1>}, {pipeline_mode = #tpu.pipeline_mode<synchronous>, transform_indices = @transform_5, window_bounds = array<i64: 9, 6>}, {pipeline_mode = #tpu.pipeline_mode<synchronous>, transform_indices = @transform_6, window_bounds = array<i64: 9, 1>}, {transform_indices = @transform_7, window_bounds = array<i64: 9, 128>}]} {
    %c0 = arith.constant 0 : index
    %c0_0 = arith.constant 0 : index
    %0 = vector.load %arg1[%c0, %c0_0] : memref<7x128xf32, #tpu.memory_space<vmem>>, vector<7x128xf32>
    %c0_1 = arith.constant 0 : index
    %c0_2 = arith.constant 0 : index
    %1 = vector.load %arg2[%c0_1, %c0_2] : memref<6x7xf32, #tpu.memory_space<vmem>>, vector<6x7xf32>
    %cst = arith.constant dense<0.000000e+00> : vector<6x128xf32>
    %2 = tpu.matmul %1, %0, %cst {dimension_numbers = #tpu.dot_dimension_numbers<[1], [0], [0], [1], [0, 0, 1, 1], [], []>} : vector<6x7xf32>, vector<7x128xf32>, vector<6x128xf32> -> vector<6x128xf32>
    %c0_3 = arith.constant 0 : index
    %c0_4 = arith.constant 0 : index
    %3 = vector.load %arg3[%c0_3, %c0_4] : memref<6x1xf32, #tpu.memory_space<vmem>>, vector<6x1xf32>
    %4 = vector.broadcast %3 : vector<6x1xf32> to vector<6x128xf32>
    %5 = arith.addf %2, %4 : vector<6x128xf32>
    %6 = math.tanh %5 : vector<6x128xf32>
    %c0_5 = arith.constant 0 : index
    %c0_6 = arith.constant 0 : index
    %7 = vector.load %arg4[%c0_5, %c0_6] : memref<6x6xf32, #tpu.memory_space<vmem>>, vector<6x6xf32>
    %cst_7 = arith.constant dense<0.000000e+00> : vector<6x128xf32>
    %8 = tpu.matmul %7, %6, %cst_7 {dimension_numbers = #tpu.dot_dimension_numbers<[1], [0], [0], [1], [0, 0, 1, 1], [], []>} : vector<6x6xf32>, vector<6x128xf32>, vector<6x128xf32> -> vector<6x128xf32>
    %c0_8 = arith.constant 0 : index
    %c0_9 = arith.constant 0 : index
    %9 = vector.load %arg5[%c0_8, %c0_9] : memref<6x1xf32, #tpu.memory_space<vmem>>, vector<6x1xf32>
    %10 = vector.broadcast %9 : vector<6x1xf32> to vector<6x128xf32>
    %11 = arith.addf %8, %10 : vector<6x128xf32>
    %12 = math.tanh %11 : vector<6x128xf32>
    %c0_10 = arith.constant 0 : index
    %c0_11 = arith.constant 0 : index
    %13 = vector.load %arg6[%c0_10, %c0_11] : memref<9x6xf32, #tpu.memory_space<vmem>>, vector<9x6xf32>
    %cst_12 = arith.constant dense<0.000000e+00> : vector<9x128xf32>
    %14 = tpu.matmul %13, %12, %cst_12 {dimension_numbers = #tpu.dot_dimension_numbers<[1], [0], [0], [1], [0, 0, 1, 1], [], []>} : vector<9x6xf32>, vector<6x128xf32>, vector<9x128xf32> -> vector<9x128xf32>
    %c0_13 = arith.constant 0 : index
    %c0_14 = arith.constant 0 : index
    %15 = vector.load %arg7[%c0_13, %c0_14] : memref<9x1xf32, #tpu.memory_space<vmem>>, vector<9x1xf32>
    %16 = vector.broadcast %15 : vector<9x1xf32> to vector<9x128xf32>
    %17 = arith.addf %14, %16 : vector<9x128xf32>
    %18 = tpu.iota {dimensions = array<i32: 0>} : vector<9x9xi32>
    %19 = tpu.iota {dimensions = array<i32: 1>} : vector<9x9xi32>
    %c0_i32 = arith.constant 0 : i32
    %20 = vector.broadcast %c0_i32 : i32 to vector<9x9xi32>
    %c0_i32_15 = arith.constant 0 : i32
    %21 = vector.broadcast %c0_i32_15 : i32 to vector<9x9xi32>
    %c3_i32 = arith.constant 3 : i32
    %22 = vector.broadcast %c3_i32 : i32 to vector<9x9xi32>
    %23 = arith.cmpi sge, %18, %22 : vector<9x9xi32>
    %24 = arith.extui %23 : vector<9x9xi1> to vector<9x9xi32>
    %25 = arith.addi %20, %24 : vector<9x9xi32>
    %c3_i32_16 = arith.constant 3 : i32
    %26 = vector.broadcast %c3_i32_16 : i32 to vector<9x9xi32>
    %27 = arith.cmpi sge, %19, %26 : vector<9x9xi32>
    %28 = arith.extui %27 : vector<9x9xi1> to vector<9x9xi32>
    %29 = arith.addi %21, %28 : vector<9x9xi32>
    %c6_i32 = arith.constant 6 : i32
    %30 = vector.broadcast %c6_i32 : i32 to vector<9x9xi32>
    %31 = arith.cmpi sge, %18, %30 : vector<9x9xi32>
    %32 = arith.extui %31 : vector<9x9xi1> to vector<9x9xi32>
    %33 = arith.addi %25, %32 : vector<9x9xi32>
    %c6_i32_17 = arith.constant 6 : i32
    %34 = vector.broadcast %c6_i32_17 : i32 to vector<9x9xi32>
    %35 = arith.cmpi sge, %19, %34 : vector<9x9xi32>
    %36 = arith.extui %35 : vector<9x9xi1> to vector<9x9xi32>
    %37 = arith.addi %29, %36 : vector<9x9xi32>
    %38 = arith.cmpi eq, %33, %37 : vector<9x9xi32>
    %39 = arith.extui %38 : vector<9x9xi1> to vector<9x9xi32>
    %40 = arith.sitofp %39 : vector<9x9xi32> to vector<9x9xf32>
    %41 = arith.mulf %17, %17 : vector<9x128xf32>
    %cst_18 = arith.constant dense<0.000000e+00> : vector<9x128xf32>
    %42 = tpu.matmul %40, %41, %cst_18 {dimension_numbers = #tpu.dot_dimension_numbers<[1], [0], [0], [1], [0, 0, 1, 1], [], []>} : vector<9x9xf32>, vector<9x128xf32>, vector<9x128xf32> -> vector<9x128xf32>
    %cst_19 = arith.constant 1.000000e-24 : f32
    %43 = vector.broadcast %cst_19 : f32 to vector<9x128xf32>
    %44 = arith.maximumf %42, %43 : vector<9x128xf32>
    %45 = math.rsqrt %44 : vector<9x128xf32>
    %46 = arith.mulf %17, %45 : vector<9x128xf32>
    %c0_20 = arith.constant 0 : index
    %c0_21 = arith.constant 0 : index
    %47 = vector.load %arg8[%c0_20, %c0_21] : memref<9x128xf32, #tpu.memory_space<vmem>>, vector<9x128xf32>
    tpu.vector_store %arg8[%c0_20, %c0_21], %46 {strides = array<i32>} : memref<9x128xf32, #tpu.memory_space<vmem>>, vector<9x128xf32>,
    return
  }
  func.func @transform_0(%arg0: i32) -> (i32, i32) {
    %c0_i32 = arith.constant 0 : i32
    %c0_i32_0 = arith.constant 0 : i32
    return %c0_i32, %arg0 : i32, i32
  }
  func.func @transform_1(%arg0: i32) -> (i32, i32) {
    %c0_i32 = arith.constant 0 : i32
    %c0_i32_0 = arith.constant 0 : i32
    %c0_i32_1 = arith.constant 0 : i32
    return %c0_i32, %c0_i32_0 : i32, i32
  }
  func.func @transform_2(%arg0: i32) -> (i32, i32) {
    %c0_i32 = arith.constant 0 : i32
    %c0_i32_0 = arith.constant 0 : i32
    %c0_i32_1 = arith.constant 0 : i32
    return %c0_i32, %c0_i32_0 : i32, i32
  }
  func.func @transform_3(%arg0: i32) -> (i32, i32) {
    %c0_i32 = arith.constant 0 : i32
    %c0_i32_0 = arith.constant 0 : i32
    %c0_i32_1 = arith.constant 0 : i32
    return %c0_i32, %c0_i32_0 : i32, i32
  }
  func.func @transform_4(%arg0: i32) -> (i32, i32) {
    %c0_i32 = arith.constant 0 : i32
    %c0_i32_0 = arith.constant 0 : i32
    %c0_i32_1 = arith.constant 0 : i32
    return %c0_i32, %c0_i32_0 : i32, i32
  }
  func.func @transform_5(%arg0: i32) -> (i32, i32) {
    %c0_i32 = arith.constant 0 : i32
    %c0_i32_0 = arith.constant 0 : i32
    %c0_i32_1 = arith.constant 0 : i32
    return %c0_i32, %c0_i32_0 : i32, i32
  }
  func.func @transform_6(%arg0: i32) -> (i32, i32) {
    %c0_i32 = arith.constant 0 : i32
    %c0_i32_0 = arith.constant 0 : i32
    %c0_i32_1 = arith.constant 0 : i32
    return %c0_i32, %c0_i32_0 : i32, i32
  }
  func.func @transform_7(%arg0: i32) -> (i32, i32) {
    %c0_i32 = arith.constant 0 : i32
    %c0_i32_0 = arith.constant 0 : i32
    return %c0_i32, %arg0 : i32, i32
  }
}

</mosaic_0001>

<bundles_post_ra>
// kernel: direction_computer.1
= control target key start
LH: loop header
LB: loop body
LE: loop exit
PB: predicated region body
PF: predicated region fallthrough
CT: control target
= control target key end

     0   :  { %vm38_vm0 = vcmask 1046528   ;;  %vm34_vm1 = vcmask 56320   ;;  %v264_v2 = vmov 0   ;;  %vm74_vm2 = vcmask 1045504   ;;  %s344_s0 = inlined_call_operand.vmem [shape: f32[7,128], index: 0, kind: input, shape index: {}]   ;;  %s345_s1 = inlined_call_operand.vmem [shape: f32[6,7], index: 1, kind: input, shape index: {}]   ;;  %s346_s2 = inlined_call_operand.vmem [shape: f32[6,1], index: 2, kind: input, shape index: {}]   ;;  %s347_s4 = inlined_call_operand.vmem [shape: f32[6,1], index: 4, kind: input, shape index: {}]   ;;  %s348_s3 = inlined_call_operand.vmem [shape: f32[6,6], index: 3, kind: input, shape index: {}]   ;;  %s349_s6 = inlined_call_operand.vmem [shape: f32[9,1], index: 6, kind: input, shape index: {}]   ;;  %s350_s5 = inlined_call_operand.vmem [shape: f32[9,6], index: 5, kind: input, shape index: {}]   ;;  %s351_s7 = inlined_call_operand.vmem [shape: f32[9,128], index: 7, kind: output, shape index: {}]  }
   0x1   :  { %v26_v0 = vld [vmem:[%s344_s0] sm:$0x7f]  ;;  %254 = vset.pattern.permute.xlu0 %v264_v2  ;;  %255 = vset.pattern.permute.xlu1 %v264_v2  ;;  %vm70_vm3 = vcmask 48128   ;;  %v102_v10 = vld [vmem:[%s349_s6 + $0x8] sm:$0x1]  ;;  %v145_v18 = vlaneseq  ;;  %vm180_vm8 = vcmask 1040384  }
   0x2   :  { %v27_v1 = vld [vmem:[%s345_s1] sm:$0x3f]  ;;  %237 = vmatpush.msk.msra.mxu0 %vm38_vm0, %v26_v0  ;;  %110 = vperm.xlu1 %255, %v102_v10   ;;  %v100_v17 = vld [vmem:[%s350_s5 + $0x8] sm:$0x1]  ;;  %v265_v35 = vmov 0.0   ;;  %vm173_vm11 = vcmask 72704  }
   0x3   :  { %v28_v3 = vld [vmem:[%s346_s2] sm:$0x3f]  ;;  %238 = vmatmul.msk.f32.vlgmr.msra.gmra.mxu0 %vm34_vm1, %v27_v1  ;;  %v146_v20 = vshrl.u32 %v145_v18, 7  ;;  %v149_v21 = vand.u32 127, %v145_v18 }
   0x4   :  { %31 = vperm.xlu0 %254, %v28_v3   ;;  %v64_v4 = vld [vmem:[%s347_s4] sm:$0x3f] }
   0x5   :  { %v63_v8 = vld [vmem:[%s348_s3] sm:$0x3f]  ;;  %vm150_vm4 = vcmp.ge.s32.totalorder %v146_v20, 3  ;;  %vm154_vm5 = vcmp.ge.s32.totalorder %v149_v21, 3  ;;  %vm156_vm6 = vcmp.ge.s32.totalorder %v146_v20, 6  ;;  %vm162_vm7 = vcmp.ge.s32.totalorder %v149_v21, 6 }
   0x6   :  { %v101_v11 = vld [vmem:[%s349_s6] sm:$0xff]  ;;  %v152_v23 = vsel %vm150_vm4, 1, %v264_v2  ;;  %v155_v24 = vsel %vm154_vm5, 1, %v264_v2  ;;  %v158_v25 = vsel %vm156_vm6, 1, %v264_v2  ;;  %v163_v26 = vsel %vm162_vm7, 1, %v264_v2 }
   0x7   :  { %v99_v15 = vld [vmem:[%s350_s5] sm:$0xff]  ;;  %v160_v28 = vadd.s32 %v158_v25, %v152_v23  ;;  %v164_v29 = vadd.s32 %v163_v26, %v155_v24 }
   0x9   :  { %vm165_vm9 = vcmp.eq.s32.totalorder %v160_v28, %v164_v29  ;;  %vm244_vm10 = vcmp.eq.s32.totalorder %v164_v29, 2 }
   0xa   :  { %105 = vperm.xlu1 %255, %v101_v11   ;;  %v245_v36 = vsel %vm165_vm9, 1.0, %v265_v35  ;;  %v246_v37 = vsel %vm244_vm10, 1.0, %v265_v35 }
   0xc   :  { %67 = vperm.xlu0 %254, %v64_v4  }
  0x74   :  { %v111_v19 = vpop.permute.xlu1 %110 }
  0x76   :  { %v32_v5 = vpop.permute.xlu0 %31 }
  0x7c   :  { %v106_v27 = vpop.permute.xlu1 %105 }
  0x7e   :  { %v68_v12 = vpop.permute.xlu0 %67 }
  0x80   :  { %v59_v6 = vpop.f32.mrf.mxu0 }
  0x81   :  { %v60_v7 = vadd.f32 %v59_v6, %v32_v5 }
  0x83   :  { %256 = vtanh.f32 %v60_v7 }
  0x89   :  { %v257_v9 = vpop.eup %256 }
  0x8a   :  { %239 = vmatpush.msk.msra.mxu1 %vm74_vm2, %v257_v9 }
  0x8b   :  { %240 = vmatmul.msk.f32.vlgmr.msra.gmra.mxu1 %vm70_vm3, %v63_v8 }
 0x108   :  { %v95_v13 = vpop.f32.mrf.mxu1 }
 0x109   :  { %v96_v14 = vadd.f32 %v95_v13, %v68_v12 }
 0x10b   :  { %258 = vtanh.f32 %v96_v14 }
 0x111   :  { %v259_v16 = vpop.eup %258 }
 0x112   :  { %241 = vmatpush.msk.msra.mxu2 %vm74_vm2, %v259_v16 }
 0x113   :  { %242 = vmatmul.msk.f32.vlgmr.msra.gmra.mxu2 %vm70_vm3, %v99_v15 }
 0x11b   :  { %243 = vmatmul.msk.f32.gmra.mxu2 %vm70_vm3, %v100_v17 }
 0x196   :  { %v139_v22 = vpop.f32.mrf.mxu2 }
 0x197   :  { %v140_v31 = vadd.f32 %v139_v22, %v106_v27 }
 0x199   :  { %v171_v34 = vmul.f32 %v140_v31, %v140_v31 }
 0x19e   :  { %v142_v30 = vpop.f32.mrf.mxu2 }
 0x19f   :  { %v143_v32 = vadd.f32 %v142_v30, %v111_v19 }
 0x1a1   :  { %v172_v33 = vmul.f32 %v143_v32, %v143_v32 }
 0x1a3   :  { %247 = vmatpush.msk.msrb.mxu0 %vm180_vm8, %v172_v33  ;;  %250 = vmatpush.msk.msra.mxu3 %vm180_vm8, %v172_v33 }
 0x1a5   :  { %199 = vmatpush.msrb.mxu0 %v171_v34  ;;  %251 = vmatpush.msra.mxu3 %v171_v34 }
 0x1a6   :  { %248 = vmatmul.msk.f32.vlgmr.msrb.gmra.mxu0 %vm173_vm11, %v245_v36  ;;  %249 = vmatmul.msk.f32.vlgmr.msra.gmra.mxu3 %vm173_vm11, %v246_v37 }
 0x223   :  { %v201_v38 = vpop.f32.mrf.mxu0 }
 0x224   :  { %v207_v39 = vmax.f32 %v201_v38, 1e-24 }
 0x226   :  { %260 = vrsqrt.f32 %v207_v39  ;;  %vm215_vm12 = vweird.f32 %v207_v39 }
 0x229   :  { %v204_v40 = vpop.f32.mrf.mxu3 }
 0x22a   :  { %v208_v41 = vmax.f32 %v204_v40, 1e-24 }
 0x22c   :  { %v261_v42 = vpop.eup %260  ;;  %262 = vrsqrt.f32 %v208_v41  ;;  %vm225_vm0 = vweird.f32 %v208_v41 }
 0x22d   :  { %v210_v43 = vmul.f32 %v261_v42, %v207_v39  ;;  %vm216_vm13 = vweird.f32 %v261_v42 }
 0x22e   :  { %vm217_vm14 = vmor %vm215_vm12, %vm216_vm13 }
 0x22f   :  { %v211_v44 = vmul.f32 %v261_v42, %v210_v43 }
 0x231   :  { %v212_v45 = vmul.f32 0.5, %v211_v44 }
 0x232   :  { %v263_v46 = vpop.eup %262 }
 0x233   :  { %v213_v47 = vsub.f32 1.5, %v212_v45  ;;  %v220_v48 = vmul.f32 %v263_v46, %v208_v41  ;;  %vm226_vm15 = vweird.f32 %v263_v46 }
 0x234   :  { %vm227_vm1 = vmor %vm225_vm0, %vm226_vm15 }
 0x235   :  { %v214_v49 = vmul.f32 %v261_v42, %v213_v47  ;;  %v221_v50 = vmul.f32 %v263_v46, %v220_v48 }
 0x237   :  { %v218_v51 = vsel %vm217_vm14, %v261_v42, %v214_v49  ;;  %v222_v52 = vmul.f32 0.5, %v221_v50 }
 0x238   :  { %v229_v53 = vmul.f32 %v218_v51, %v140_v31 }
 0x239   :  { %v223_v54 = vsub.f32 1.5, %v222_v52 }
 0x23a   :  { %231 = vst [vmem:[%s351_s7] sm:$0xff] %v229_v53 }
 0x23b   :  { %v224_v55 = vmul.f32 %v263_v46, %v223_v54 }
 0x23d   :  { %v228_v56 = vsel %vm227_vm1, %v263_v46, %v224_v55 }
 0x23e   :  { %v230_v57 = vmul.f32 %v228_v56, %v143_v32 }
 0x240   :  { %232 = vst [vmem:[%s351_s7 + $0x8] sm:$0x1] %v230_v57 }

</bundles_post_ra>
